<compile_context>
chip_gen: v6e
topology: v6e:2x2x1
jax: 0.10.0
libtpu: 0.0.40
codegen_flags: <defaults>
</compile_context>

<pallas_src>
import functools
import numpy as np
import jax
import jax.numpy as jnp
from jax.experimental import pallas as pl
from jax.experimental.pallas import tpu as pltpu


def _round_up(x, m):
    return ((x + m - 1) // m) * m


def _decoder_kernel(x_ref, w1_ref, b1_ref, w2_ref, b2_ref, o_ref, *, tile_n):
    # fc1 + ReLU, recomputed per output tile.  x/W1/b1 blocks are resident
    # (constant index_map), so the recompute is ~2*tile_m*bneck*inter flops
    # per step -- negligible -- and keeps every grid axis stateless so both
    # axes can be "parallel" (clean 2-TC split of the W2 stream on v7x).
    h = jnp.dot(x_ref[...].astype(jnp.bfloat16), w1_ref[...],
                preferred_element_type=jnp.float32)
    h = jnp.maximum(h + b1_ref[...], 0.0).astype(jnp.bfloat16)

    # fc2 tile: (tile_m, inter)bf16 @ (inter, tile_n)bf16 -> f32 accumulation.
    y = jnp.dot(h, w2_ref[...], preferred_element_type=jnp.float32)

    # b2 is fully resident (only out_dim*4 bytes total); slice the current
    # tile in-kernel instead of streaming a tiny per-step DMA for it.
    off = pl.multiple_of(pl.program_id(1) * tile_n, 128)
    y = y + b2_ref[:, pl.ds(off, tile_n)]

    # f32 epilogue (v5e VPU/EUP have no bf16); output dtype = module dtype.
    o_ref[...] = jax.nn.sigmoid(y).astype(o_ref.dtype)


def _choose_tiling(B, bneck, inter, out_dim):
    """Derive (tile_m, tile_n, vmem_limit_bytes) from the chip's VMEM size."""
    try:
        vmem_cap = int(pltpu.get_tpu_info().vmem_capacity_bytes)
        if vmem_cap < 16 * 1024 * 1024:
            vmem_cap = 64 * 1024 * 1024
    except Exception:
        vmem_cap = 64 * 1024 * 1024  # conservative (v7x-sized) fallback

    # Scoped limit: ~3/4 of physical, capped at 100 MiB
    # (v5e/v6e 128 MiB -> 96-100 MiB, v7x 64 MiB -> 48 MiB).
    vmem_limit = min(3 * vmem_cap // 4, 100 * 1024 * 1024)
    budget = int(vmem_limit * 0.80)            # headroom for internal scratch

    tile_m = B if B <= 256 else 256            # full-B block for small batch

    # Conservative double-buffered footprint accounting.
    out_dim_pad = _round_up(out_dim, 128)
    fixed = (2 * tile_m * bneck * 4            # x blocks   (f32)
             + 2 * bneck * inter * 2           # W1         (bf16, resident)
             + 2 * inter * 4                   # b1         (f32,  resident)
             + 2 * out_dim_pad * 4)            # b2 padded  (f32,  resident)
    per_col = 2 * inter * 2 + 2 * tile_m * 4   # W2 (bf16) + out (f32) streams
    tile_n = max(budget - fixed, 0) // per_col
    tile_n = max(128, (tile_n // 128) * 128)   # multiple of 128 (lane width)
    tile_n = min(tile_n, out_dim_pad)          # never wider than the output
    return tile_m, tile_n, vmem_limit


def dense_decoder_forward(x, params, input_shape):
    """x: (B, bottleneck) float32. Returns (B, C, H, W) float32."""
    w1, b1, w2, b2 = params      # w1: (bneck, inter), w2: (inter, out_dim)
    B, bneck = x.shape
    inter = w1.shape[1]
    out_dim = w2.shape[1]
    C, H, W = input_shape
    assert out_dim == C * H * W

    # bf16 weights: the kernel is W2-bandwidth bound, so halving W2 bytes
    # ~halves wall clock.  (In a real model, pre-cast weights once.)
    w1b = w1.astype(jnp.bfloat16)
    w2b = w2.astype(jnp.bfloat16)

    tile_m, tile_n, vmem_limit = _choose_tiling(B, bneck, inter, out_dim)
    n_i = pl.cdiv(B, tile_m)
    n_j = pl.cdiv(out_dim, tile_n)

    # b2 stays resident and is sliced in-kernel; pad it so the last tile's
    # pl.ds slice never reads out of bounds.
    out_pad = n_j * tile_n
    b2p = b2 if out_pad == out_dim else jnp.pad(
        b2, ((0, 0), (0, out_pad - out_dim)))

    cost = pl.CostEstimate(
        flops=2 * B * bneck * inter * n_j + 2 * B * inter * out_dim,
        transcendentals=2 * B * out_dim,                 # exp + reciprocal
        bytes_accessed=(B * bneck * 4                    # x (f32)
                        + bneck * inter * 2 + inter * 4  # W1 bf16, b1 f32
                        + inter * out_dim * 2 + out_pad * 4  # W2 bf16, b2 f32
                        + B * out_dim * 4),              # output f32
    )

    flat = pl.pallas_call(
        functools.partial(_decoder_kernel, tile_n=tile_n),
        out_shape=jax.ShapeDtypeStruct((B, out_dim), jnp.float32),
        grid=(n_i, n_j),
        in_specs=[
            pl.BlockSpec((tile_m, bneck), lambda i, j: (i, 0)),   # x
            pl.BlockSpec((bneck, inter), lambda i, j: (0, 0)),    # W1 resident
            pl.BlockSpec((1, inter), lambda i, j: (0, 0)),        # b1 resident
            pl.BlockSpec((inter, tile_n), lambda i, j: (0, j)),   # W2 streamed
            pl.BlockSpec((1, out_pad), lambda i, j: (0, 0)),      # b2 resident
        ],
        out_specs=pl.BlockSpec((tile_m, tile_n), lambda i, j: (i, j)),
        compiler_params=pltpu.CompilerParams(
            # Both axes are stateless (fc1 recomputed per tile) -> parallel,
            # so v7x megacore shards output tiles across both TensorCores.
            dimension_semantics=("parallel", "parallel"),
            vmem_limit_bytes=vmem_limit,
        ),
        cost_estimate=cost,
    )(x, w1b, b1, w2b, b2p)

    return flat.reshape(-1, C, H, W)


def init_params(key, bottleneck_size, input_shape):
    """Deterministic synthetic params with the same shapes as the nn.Module.

    PyTorch stores fc.weight as (out, in); we keep them transposed as
    (in, out) so the kernel computes x @ W directly.
    """
    intermediate = max(64, bottleneck_size)
    out_dim = int(np.prod(input_shape))
    k1, k2, k3, k4 = jax.random.split(key, 4)
    s1 = 1.0 / np.sqrt(bottleneck_size)
    s2 = 1.0 / np.sqrt(intermediate)
    w1 = jax.random.uniform(k1, (bottleneck_size, intermediate),
                            jnp.float32, -s1, s1)
    b1 = jax.random.uniform(k2, (1, intermediate), jnp.float32, -s1, s1)
    w2 = jax.random.uniform(k3, (intermediate, out_dim),
                            jnp.float32, -s2, s2)
    b2 = jax.random.uniform(k4, (1, out_dim), jnp.float32, -s2, s2)
    return (w1, b1, w2, b2)


if __name__ == "__main__":
    key = jax.random.PRNGKey(0)
    kx, kp = jax.random.split(key)

    input_shape = (4, 16, 16)       # (C, H, W) -> prod = 1024
    bottleneck = 64
    batch = 2

    x = jax.random.normal(kx, (batch, bottleneck), jnp.float32)
    params = init_params(kp, bottleneck, input_shape)

    out = dense_decoder_forward(x, params, input_shape)
    out = jax.block_until_ready(out)

    # Pure-JAX reference mimicking the kernel's mixed precision
    # (bf16 weights/activations into the MXU, f32 accumulation + biases).
    w1, b1, w2, b2 = params
    h_ref = jnp.maximum(
        jnp.dot(x.astype(jnp.bfloat16), w1.astype(jnp.bfloat16),
                preferred_element_type=jnp.float32) + b1, 0.0
    ).astype(jnp.bfloat16)
    y_ref = jnp.dot(h_ref, w2.astype(jnp.bfloat16),
                    preferred_element_type=jnp.float32) + b2
    ref = jax.nn.sigmoid(y_ref).reshape(-1, *input_shape)

    np.testing.assert_allclose(np.asarray(out), np.asarray(ref),
                               rtol=2e-3, atol=2e-3)
    assert out.shape == (batch, *input_shape)

    print("KERNEL_OK")
</pallas_src>

<mosaic_0001>
module attributes {stable_mosaic.version = 11 : i64} {
  func.func @_decoder_kernel(%arg0: i32, %arg1: i32, %arg2: memref<2x64xf32, #tpu.memory_space<vmem>>, %arg3: memref<64x64xbf16, #tpu.memory_space<vmem>>, %arg4: memref<1x64xf32, #tpu.memory_space<vmem>>, %arg5: memref<64x1024xbf16, #tpu.memory_space<vmem>>, %arg6: memref<1x1024xf32, #tpu.memory_space<vmem>>, %arg7: memref<2x1024xf32, #tpu.memory_space<vmem>>) attributes {dimension_semantics = [#tpu.dimension_semantics<parallel>, #tpu.dimension_semantics<parallel>], iteration_bounds = array<i64: 1, 1>, scalar_prefetch = 0 : i64, scratch_operands = 0 : i64, tpu.core_type = #tpu.core_type<tc>, window_params = [{transform_indices = @transform_0, window_bounds = array<i64: 2, 64>}, {pipeline_mode = #tpu.pipeline_mode<synchronous>, transform_indices = @transform_1, window_bounds = array<i64: 64, 64>}, {pipeline_mode = #tpu.pipeline_mode<synchronous>, transform_indices = @transform_2, window_bounds = array<i64: 1, 64>}, {transform_indices = @transform_3, window_bounds = array<i64: 64, 1024>}, {pipeline_mode = #tpu.pipeline_mode<synchronous>, transform_indices = @transform_4, window_bounds = array<i64: 1, 1024>}, {transform_indices = @transform_5, window_bounds = array<i64: 2, 1024>}]} {
    %c0 = arith.constant 0 : index
    %c0_0 = arith.constant 0 : index
    %0 = vector.load %arg2[%c0, %c0_0] : memref<2x64xf32, #tpu.memory_space<vmem>>, vector<2x64xf32>
    %1 = arith.truncf %0 : vector<2x64xf32> to vector<2x64xbf16>
    %c0_1 = arith.constant 0 : index
    %c0_2 = arith.constant 0 : index
    %2 = vector.load %arg3[%c0_1, %c0_2] : memref<64x64xbf16, #tpu.memory_space<vmem>>, vector<64x64xbf16>
    %cst = arith.constant dense<0.000000e+00> : vector<2x64xf32>
    %3 = tpu.matmul %1, %2, %cst {dimension_numbers = #tpu.dot_dimension_numbers<[1], [0], [0], [1], [0, 0, 1, 1], [], []>} : vector<2x64xbf16>, vector<64x64xbf16>, vector<2x64xf32> -> vector<2x64xf32>
    %c0_3 = arith.constant 0 : index
    %c0_4 = arith.constant 0 : index
    %4 = vector.load %arg4[%c0_3, %c0_4] : memref<1x64xf32, #tpu.memory_space<vmem>>, vector<1x64xf32>
    %5 = vector.broadcast %4 : vector<1x64xf32> to vector<2x64xf32>
    %6 = arith.addf %3, %5 : vector<2x64xf32>
    %cst_5 = arith.constant 0.000000e+00 : f32
    %7 = vector.broadcast %cst_5 : f32 to vector<2x64xf32>
    %8 = arith.maximumf %6, %7 : vector<2x64xf32>
    %9 = arith.truncf %8 : vector<2x64xf32> to vector<2x64xbf16>
    %c0_6 = arith.constant 0 : index
    %c0_7 = arith.constant 0 : index
    %10 = vector.load %arg5[%c0_6, %c0_7] : memref<64x1024xbf16, #tpu.memory_space<vmem>>, vector<64x1024xbf16>
    %cst_8 = arith.constant dense<0.000000e+00> : vector<2x1024xf32>
    %11 = tpu.matmul %9, %10, %cst_8 {dimension_numbers = #tpu.dot_dimension_numbers<[1], [0], [0], [1], [0, 0, 1, 1], [], []>} : vector<2x64xbf16>, vector<64x1024xbf16>, vector<2x1024xf32> -> vector<2x1024xf32>
    %c1024_i32 = arith.constant 1024 : i32
    %12 = arith.muli %arg1, %c1024_i32 : i32
    %13 = tpu.assume_multiple %12, 128 : i32
    %c0_9 = arith.constant 0 : index
    %14 = arith.index_cast %13 : i32 to index
    %15 = vector.load %arg6[%c0_9, %14] : memref<1x1024xf32, #tpu.memory_space<vmem>>, vector<1x1024xf32>
    %16 = vector.broadcast %15 : vector<1x1024xf32> to vector<2x1024xf32>
    %17 = arith.addf %11, %16 : vector<2x1024xf32>
    %18 = arith.negf %17 : vector<2x1024xf32>
    %19 = math.exp %18 : vector<2x1024xf32>
    %cst_10 = arith.constant 1.000000e+00 : f32
    %20 = vector.broadcast %cst_10 : f32 to vector<2x1024xf32>
    %21 = arith.addf %20, %19 : vector<2x1024xf32>
    %22 = arith.divf %20, %21 : vector<2x1024xf32>
    %c0_11 = arith.constant 0 : index
    %c0_12 = arith.constant 0 : index
    %23 = vector.load %arg7[%c0_11, %c0_12] : memref<2x1024xf32, #tpu.memory_space<vmem>>, vector<2x1024xf32>
    tpu.vector_store %arg7[%c0_11, %c0_12], %22 {strides = array<i32>} : memref<2x1024xf32, #tpu.memory_space<vmem>>, vector<2x1024xf32>,
    return
  }
  func.func @transform_0(%arg0: i32, %arg1: i32) -> (i32, i32) {
    %c0_i32 = arith.constant 0 : i32
    %c0_i32_0 = arith.constant 0 : i32
    return %arg0, %c0_i32 : i32, i32
  }
  func.func @transform_1(%arg0: i32, %arg1: i32) -> (i32, i32) {
    %c0_i32 = arith.constant 0 : i32
    %c0_i32_0 = arith.constant 0 : i32
    %c0_i32_1 = arith.constant 0 : i32
    return %c0_i32, %c0_i32_0 : i32, i32
  }
  func.func @transform_2(%arg0: i32, %arg1: i32) -> (i32, i32) {
    %c0_i32 = arith.constant 0 : i32
    %c0_i32_0 = arith.constant 0 : i32
    %c0_i32_1 = arith.constant 0 : i32
    return %c0_i32, %c0_i32_0 : i32, i32
  }
  func.func @transform_3(%arg0: i32, %arg1: i32) -> (i32, i32) {
    %c0_i32 = arith.constant 0 : i32
    %c0_i32_0 = arith.constant 0 : i32
    return %c0_i32, %arg1 : i32, i32
  }
  func.func @transform_4(%arg0: i32, %arg1: i32) -> (i32, i32) {
    %c0_i32 = arith.constant 0 : i32
    %c0_i32_0 = arith.constant 0 : i32
    %c0_i32_1 = arith.constant 0 : i32
    return %c0_i32, %c0_i32_0 : i32, i32
  }
  func.func @transform_5(%arg0: i32, %arg1: i32) -> (i32, i32) {
    %c0_i32 = arith.constant 0 : i32
    return %arg0, %arg1 : i32, i32
  }
}

</mosaic_0001>

<bundles_post_ra>
// kernel: tpu_custom_call.1
= control target key start
LH: loop header
LB: loop body
LE: loop exit
PB: predicated region body
PF: predicated region fallthrough
CT: control target
= control target key end

     0   :  { %10 = vsyncpa [#allocation3], 0  ;;  %s978_s0 = inlined_call_operand.hbm [shape: f32[2,64], index: 0, kind: input, shape index: {}]   ;;  %s979_s1 = inlined_call_operand.hbm [shape: bf16[64,64], index: 1, kind: input, shape index: {}]   ;;  %s980_s2 = inlined_call_operand.vmem [shape: f32[1,64], index: 2, kind: input, shape index: {}]   ;;  %s981_s3 = inlined_call_operand.hbm [shape: bf16[64,1024], index: 3, kind: input, shape index: {}]   ;;  %s982_s4 = inlined_call_operand.hbm [shape: f32[1,1024], index: 4, kind: input, shape index: {}]   ;;  %s983_s5 = inlined_call_operand.hbm [shape: f32[2,1024], index: 5, kind: output, shape index: {}]  }
   0x1   :  { %11 = vsyncpa [#allocation6], 0 }
   0x2   :  { %12 = vsyncpa [#allocation9], 0 }
   0x3   :  { %13 = vsyncpa [#allocation4], 0  ;;  %s901_s18 = smov [#allocation5]  }
   0x4   :  { %s29_s19 = sshll.u32 %s901_s18, 4  ;;  %s30_s19 = int_to_ptr.vmem [resolvable:$true] %s29_s19 }
   0x5   :  { %s801_s20 = scalar_lea.vmem %s30_s19, 512  ;;  %p806_p1 = scmp.lt.s32.totalorder %s30_s19, %s30_s19 }
   0x6   :  { %p802_p0 = scmp.ne.s32.totalorder %s30_s19, %s801_s20  ;;  %p807_p2 = scmp.lt.s32.totalorder %s801_s20, %s801_s20 }
   0x8   :  { %p808_p3 = por %p807_p2, %p806_p1 }
   0xa   :  { %p809_p4 = pnand %p808_p3, %p802_p0 }
   0xc   :  { %812 = shalt.err (!%p809_p4)
}
   0xd   :  { %s902_s21 = smov 64   ;;  %s903_s22 = smov 4  }
   0xe   :  { %35 = dma.hbm_to_vmem [thread:$0]  %s979_s1, 512, %s30_s19, [#allocation6], %s902_s21, %s902_s21, %s903_s22  }
   0xf   :  { %s904_s25 = smov [#allocation2]   ;;  %s905_s27 = smov [#allocation7]  }
  0x10   :  { %s20_s26 = sshll.u32 %s904_s25, 4  ;;  %s43_s28 = sshll.u32 %s905_s27, 4  ;;  %s21_s26 = int_to_ptr.vmem [resolvable:$true] %s20_s26  ;;  %s44_s28 = int_to_ptr.vmem [resolvable:$true] %s43_s28 }
  0x11   :  { %s821_s29 = scalar_lea.vmem %s21_s26, 32  ;;  %p826_p6 = scmp.lt.s32.totalorder %s21_s26, %s21_s26 }
  0x12   :  { %p822_p5 = scmp.ne.s32.totalorder %s21_s26, %s821_s29  ;;  %p827_p7 = scmp.lt.s32.totalorder %s821_s29, %s821_s29 }
  0x14   :  { %p828_p8 = por %p827_p7, %p826_p6 }
  0x16   :  { %p829_p9 = pnand %p828_p8, %p822_p5 }
  0x18   :  { %832 = shalt.err (!%p829_p9)
}
  0x19   :  { %23 = dma.hbm_to_vmem [thread:$0]  %s978_s0, 32, %s21_s26, [#allocation3]  }
  0x1a   :  { %s841_s7 = scalar_lea.vmem %s44_s28, 4096  ;;  %p846_p11 = scmp.lt.s32.totalorder %s44_s28, %s44_s28 }
  0x1b   :  { %p842_p10 = scmp.ne.s32.totalorder %s44_s28, %s841_s7  ;;  %p847_p12 = scmp.lt.s32.totalorder %s841_s7, %s841_s7 }
  0x1d   :  { %p848_p13 = por %p847_p12, %p846_p11 }
  0x1f   :  { %p849_p0 = pnand %p848_p13, %p842_p10 }
  0x21   :  { %852 = shalt.err (!%p849_p0)
}
  0x22   :  { %s906_s1 = smov 512   ;;  %s907_s8 = smov 32  }
  0x23   :  { %49 = dma.hbm_to_vmem [thread:$0]  %s981_s3, 4096, %s44_s28, [#allocation6], %s906_s1, %s906_s1, %s907_s8  }
  0x24   :  { %s908_s11 = smov [#allocation8]  }
  0x25   :  { %s56_s12 = sshll.u32 %s908_s11, 4  ;;  %s57_s12 = int_to_ptr.vmem [resolvable:$true] %s56_s12 }
  0x26   :  { %s861_s13 = scalar_lea.vmem %s57_s12, 128  ;;  %p866_p2 = scmp.lt.s32.totalorder %s57_s12, %s57_s12 }
  0x27   :  { %p862_p1 = scmp.ne.s32.totalorder %s57_s12, %s861_s13  ;;  %p867_p3 = scmp.lt.s32.totalorder %s861_s13, %s861_s13 }
  0x29   :  { %p868_p4 = por %p867_p3, %p866_p2 }
  0x2b   :  { %p869_p5 = pnand %p868_p4, %p862_p1 }
  0x2d   :  { %872 = shalt.err (!%p869_p5)
}
  0x2e   :  { %59 = dma.hbm_to_vmem [thread:$0]  %s982_s4, 128, %s57_s12, [#allocation9]  }
  0x2f   :  { %893 = dma.done.wait [#allocation3], 32  }
  0x30   :  { %894 = vsyncadd [#allocation3], 4294967264 }
  0x31   :  { %895 = dma.done.wait [#allocation6], 4608  }
  0x32   :  { %896 = vsyncadd [#allocation6], 4294962688 }
  0x33   :  { %897 = dma.done.wait [#allocation9], 128  }
  0x34   :  { %898 = vsyncadd [#allocation9], 4294967168  ;;  %v909_v0 = vmov 0.0   ;;  %vm910_vm0 = vmmov 0   ;;  %v757_v1 = vld [vmem:[#allocation5 + $0x18] sm:$0xff]   ;;  %v758_v2 = vld [vmem:[#allocation5 + $0x10] sm:$0xff]  }
  0x35   :  { %732 = vmatprep.subr.bf16.mxu0 %v909_v0  ;;  %740 = vmatprep.mubr.msk.bf16.mxu0 %vm910_vm0, %v909_v0  ;;  %v184_v3 = vld [vmem:[#allocation7 + $0xc0] sm:$0xff]  ;;  %v759_v8 = vld [vmem:[#allocation5 + $0x8] sm:$0xff]   ;;  %v73_v18 = vld [vmem:[#allocation2] sm:$0x3]  ;;  %vm114_vm1 = vcmask 523264   ;;  %v911_v47 = vmov 0  }
  0x36   :  { %733 = vmatpush3.bf16.msra.mxu0 %v757_v1  ;;  %v188_v4 = vld [vmem:[#allocation7 + $0xe0] sm:$0xff]  ;;  %v185_v13 = vld [vmem:[#allocation7 + $0xc8] sm:$0xff]  ;;  %v74_v23 = vpack.c.bf16 %v73_v18, %v73_v18  ;;  %v186_v39 = vld [vmem:[#allocation7 + $0xd0] sm:$0xff]  ;;  %433 = vmatprep.mubr.bf16.mxu1 %v911_v47 }
  0x37   :  { %734 = vmatprep.subr.bf16.mxu0 %v909_v0  ;;  %v708_v5 = vcombine.high %v184_v3, %v188_v4  ;;  %v707_v6 = vcombine.low %v184_v3, %v188_v4  ;;  %v176_v7 = vld [vmem:[#allocation7 + $0x80] sm:$0xff]  ;;  %v189_v14 = vld [vmem:[#allocation7 + $0xe8] sm:$0xff]  ;;  %v190_v40 = vld [vmem:[#allocation7 + $0xf0] sm:$0xff] }
  0x38   :  { %v180_v9 = vld [vmem:[#allocation7 + $0xa0] sm:$0xff]  ;;  %v710_v19 = vcombine.high %v185_v13, %v189_v14  ;;  %v177_v20 = vld [vmem:[#allocation7 + $0x88] sm:$0xff]  ;;  %v709_v24 = vcombine.low %v185_v13, %v189_v14  ;;  %v187_v41 = vld [vmem:[#allocation7 + $0xd8] sm:$0xff]  ;;  %v712_v42 = vcombine.high %v186_v39, %v190_v40  ;;  %v711_v44 = vcombine.low %v186_v39, %v190_v40 }
  0x39   :  { %409 = vmatprep.subr.bf16.mxu1 %v708_v5  ;;  %v700_v10 = vcombine.high %v176_v7, %v180_v9  ;;  %v168_v11 = vld [vmem:[#allocation7 + $0x40] sm:$0xff]  ;;  %v699_v15 = vcombine.low %v176_v7, %v180_v9  ;;  %v181_v21 = vld [vmem:[#allocation7 + $0xa8] sm:$0xff]  ;;  %v191_v43 = vld [vmem:[#allocation7 + $0xf8] sm:$0xff] }
  0x3a   :  { %735 = vmatpush3.bf16.msra.mxu0 %v758_v2  ;;  %v172_v12 = vld [vmem:[#allocation7 + $0x60] sm:$0xff]  ;;  %410 = vmatpush1.bf16.msra.mxu1 %v707_v6  ;;  %v702_v25 = vcombine.high %v177_v20, %v181_v21  ;;  %v169_v26 = vld [vmem:[#allocation7 + $0x48] sm:$0xff]  ;;  %v701_v28 = vcombine.low %v177_v20, %v181_v21  ;;  %v713_v45 = vcombine.low %v187_v41, %v191_v43  ;;  %v677_v48 = vld [vmem:[%s980_s2] ss:$0 sm:$0xff]  ;;  %s913_s2 = smov [#allocation10]  }
  0x3b   :  { %736 = vmatprep.subr.bf16.mxu0 %v909_v0  ;;  %411 = vmatprep.subr.bf16.mxu1 %v700_v10  ;;  %v692_v16 = vcombine.high %v168_v11, %v172_v12  ;;  %v760_v17 = vld [vmem:[#allocation5] sm:$0xff]   ;;  %v691_v22 = vcombine.low %v168_v11, %v172_v12  ;;  %v173_v27 = vld [vmem:[#allocation7 + $0x68] sm:$0xff]  ;;  %v714_v46 = vcombine.high %v187_v41, %v191_v43  ;;  %v178_v51 = vld [vmem:[#allocation7 + $0x90] sm:$0xff]  ;;  %s665_s15 = sshll.u32 %s913_s2, 4  ;;  %s666_s15 = int_to_ptr.vmem [resolvable:$true] %s665_s15 }
  0x3c   :  { %v694_v29 = vcombine.high %v169_v26, %v173_v27  ;;  %v693_v30 = vcombine.low %v169_v26, %v173_v27  ;;  %v160_v31 = vld [vmem:[#allocation7] sm:$0xff]  ;;  %v161_v33 = vld [vmem:[#allocation7 + $0x8] sm:$0xff]  ;;  %v182_v53 = vld [vmem:[#allocation7 + $0xb0] sm:$0xff]  ;;  %s873_s16 = scalar_lea.vmem %s666_s15, 256  ;;  %p878_p7 = scmp.lt.s32.totalorder %s666_s15, %s666_s15 }
  0x3d   :  { %v164_v32 = vld [vmem:[#allocation7 + $0x20] sm:$0xff]  ;;  %v165_v35 = vld [vmem:[#allocation7 + $0x28] sm:$0xff]  ;;  %v179_v54 = vld [vmem:[#allocation7 + $0x98] sm:$0xff]  ;;  %v704_v59 = vcombine.high %v178_v51, %v182_v53  ;;  %v703_v2 = vcombine.low %v178_v51, %v182_v53  ;;  %p874_p6 = scmp.ne.s32.totalorder %s666_s15, %s873_s16  ;;  %p879_p8 = scmp.lt.s32.totalorder %s873_s16, %s873_s16 }
  0x3e   :  { %737 = vmatpush3.bf16.msra.mxu0 %v759_v8  ;;  %412 = vmatpush1.bf16.msra.mxu1 %v699_v15  ;;  %v684_v34 = vcombine.high %v160_v31, %v164_v32  ;;  %v685_v36 = vcombine.low %v161_v33, %v165_v35  ;;  %v686_v37 = vcombine.high %v161_v33, %v165_v35  ;;  %v183_v55 = vld [vmem:[#allocation7 + $0xb8] sm:$0xff]  ;;  %v170_v61 = vld [vmem:[#allocation7 + $0x50] sm:$0xff]  ;;  %v196_v20 = vld [vmem:[#allocation8] sm:$0xff] }
  0x3f   :  { %738 = vmatprep.subr.bf16.mxu0 %v909_v0  ;;  %413 = vmatprep.subr.bf16.mxu1 %v692_v16  ;;  %v683_v38 = vcombine.low %v160_v31, %v164_v32  ;;  %v706_v60 = vcombine.high %v179_v54, %v183_v55  ;;  %v174_v63 = vld [vmem:[#allocation7 + $0x70] sm:$0xff]  ;;  %v171_v0 = vld [vmem:[#allocation7 + $0x58] sm:$0xff]  ;;  %v705_v3 = vcombine.low %v179_v54, %v183_v55  ;;  %v198_v16 = vlaneseq  ;;  %p880_p9 = por %p879_p8, %p878_p7 }
  0x40   :  { %v175_v1 = vld [vmem:[#allocation7 + $0x78] sm:$0xff]  ;;  %v696_v4 = vcombine.high %v170_v61, %v174_v63  ;;  %v162_v6 = vld [vmem:[#allocation7 + $0x10] sm:$0xff]  ;;  %v695_v10 = vcombine.low %v170_v61, %v174_v63 }
  0x41   :  { %v698_v5 = vcombine.high %v171_v0, %v175_v1  ;;  %v166_v7 = vld [vmem:[#allocation7 + $0x30] sm:$0xff]  ;;  %v163_v8 = vld [vmem:[#allocation7 + $0x18] sm:$0xff]  ;;  %v697_v11 = vcombine.low %v171_v0, %v175_v1  ;;  %p881_p10 = pnand %p880_p9, %p874_p6 }
  0x42   :  { %739 = vmatpush3.bf16.msra.mxu0 %v760_v17  ;;  %414 = vmatpush1.bf16.msra.mxu1 %v691_v22  ;;  %v167_v9 = vld [vmem:[#allocation7 + $0x38] sm:$0xff]  ;;  %v688_v12 = vcombine.high %v162_v6, %v166_v7  ;;  %v687_v14 = vcombine.low %v162_v6, %v166_v7  ;;  %v964_v17 = vshrl.u32 %v198_v16, 7 }
  0x43   :  { %450 = vmatprep.subr.bf16.mxu0 %v710_v19  ;;  %415 = vmatprep.subr.bf16.mxu1 %v684_v34  ;;  %v690_v13 = vcombine.high %v163_v8, %v167_v9  ;;  %v689_v15 = vcombine.low %v163_v8, %v167_v9 }
  0x44   :  { %v200_v18 = vsub.s32 0, %v964_v17  ;;  %v208_v19 = vsub.s32 2, %v964_v17  ;;  %v204_v21 = vsub.s32 1, %v964_v17  ;;  %v212_v22 = vsub.s32 3, %v964_v17 }
  0x45   :  { %741 = vmatmul.mubr.msk.bf16.vlgmr.msra.gmra.mxu0 %vm114_vm1, %v74_v23  ;;  %v216_v43 = vsub.s32 4, %v964_v17 }
  0x46   :  { %451 = vmatpush1.bf16.msra.mxu0 %v709_v24  ;;  %416 = vmatpush1.bf16.msra.mxu1 %v683_v38  ;;  %v201_v23 = vrot.slane %v196_v20, %v200_v18  ;;  %v209_v24 = vrot.slane %v196_v20, %v208_v19  ;;  %v213_v26 = vrot.slane %v196_v20, %v212_v22 }
  0x47   :  { %452 = vmatprep.subr.bf16.mxu0 %v702_v25  ;;  %474 = vmatprep.mubr.bf16.mxu0 %v911_v47  ;;  %v205_v25 = vrot.slane %v196_v20, %v204_v21 }
  0x48   :  { %491 = vmatprep.subr.bf16.mxu1 %v712_v42 }
  0x4a   :  { %453 = vmatpush1.bf16.msra.mxu0 %v701_v28 }
  0x4b   :  { %454 = vmatprep.subr.bf16.mxu0 %v694_v29 }
  0x4e   :  { %455 = vmatpush1.bf16.msra.mxu0 %v693_v30 }
  0x4f   :  { %456 = vmatprep.subr.bf16.mxu0 %v686_v37 }
  0x52   :  { %457 = vmatpush1.bf16.msra.mxu0 %v685_v36 }
  0x53   :  { %532 = vmatprep.subr.bf16.mxu0 %v714_v46  ;;  %v228_v46 = vsub.s32 7, %v964_v17 }
 0x105   :  { %v152_v49 = vpop.f32.mrf.mxu0 }
 0x106   :  { %v153_v50 = vadd.f32 %v677_v48, %v152_v49 }
 0x107   :  { %v742_v52 = vpop.f32.mrf.mxu0 }
 0x108   :  { %v158_v56 = vmax.f32 %v153_v50, 0.0  ;;  %v229_v52 = vrot.slane %v196_v20, %v228_v46 }
 0x109   :  { %v155_v57 = vpop.f32.mrf.mxu0 }
 0x10a   :  { %v159_v58 = vpack.c.bf16 %v158_v56, %v158_v56 }
 0x10b   :  { %v743_v62 = vpop.f32.mrf.mxu0 }
 0x10c   :  { %715 = vmatmul.mubr.msk.bf16.vlgmr.msra.gmra.mxu1 %vm114_vm1, %v159_v58  ;;  %716 = vmatmul.mubr.msk.bf16.vlgmr.msra.gmra.mxu0 %vm114_vm1, %v159_v58 }
 0x10d   :  { %492 = vmatpush1.bf16.msra.mxu1 %v711_v44  ;;  %533 = vmatpush1.bf16.msra.mxu0 %v713_v45  ;;  %v224_v44 = vsub.s32 6, %v964_v17  ;;  %v220_v45 = vsub.s32 5, %v964_v17 }
 0x10e   :  { %493 = vmatprep.subr.bf16.mxu1 %v704_v59  ;;  %534 = vmatprep.subr.bf16.mxu0 %v706_v60 }
 0x10f   :  { %515 = vmatprep.mubr.bf16.mxu1 %v911_v47  ;;  %556 = vmatprep.mubr.bf16.mxu0 %v911_v47  ;;  %v217_v47 = vrot.slane %v196_v20, %v216_v43  ;;  %v225_v48 = vrot.slane %v196_v20, %v224_v44  ;;  %v221_v49 = vrot.slane %v196_v20, %v220_v45 }
 0x111   :  { %494 = vmatpush1.bf16.msra.mxu1 %v703_v2  ;;  %535 = vmatpush1.bf16.msra.mxu0 %v705_v3 }
 0x112   :  { %495 = vmatprep.subr.bf16.mxu1 %v696_v4  ;;  %536 = vmatprep.subr.bf16.mxu0 %v698_v5 }
 0x115   :  { %496 = vmatpush1.bf16.msra.mxu1 %v695_v10  ;;  %537 = vmatpush1.bf16.msra.mxu0 %v697_v11  ;;  %v912_v11 = vmov 1983009808  }
 0x116   :  { %497 = vmatprep.subr.bf16.mxu1 %v688_v12  ;;  %538 = vmatprep.subr.bf16.mxu0 %v690_v13  ;;  %v624_v12 = vunpack.c.l.s4 %v912_v11 }
 0x118   :  { %v625_v13 = vunpack.c.0.s8 %v624_v12 }
 0x119   :  { %498 = vmatpush1.bf16.msra.mxu1 %v687_v14  ;;  %539 = vmatpush1.bf16.msra.mxu0 %v689_v15 }
 0x11a   :  { %v628_v16 = vsub.s32 %v625_v13, %v964_v17 }
 0x11c   :  { %717 = vmatmul.mubr.msk.bf16.vlgmr.msra.gmra.mxu1 %vm114_vm1, %v159_v58  ;;  %718 = vmatmul.mubr.msk.bf16.vlgmr.msra.gmra.mxu0 %vm114_vm1, %v159_v58 }
 0x1cc   :  { %v435_v27 = vpop.f32.mrf.mxu1  ;;  %v476_v28 = vpop.f32.mrf.mxu0 }
 0x1cd   :  { %v436_v29 = vadd.f32 %v435_v27, %v201_v23  ;;  %v477_v30 = vadd.f32 %v476_v28, %v209_v24 }
 0x1ce   :  { %v437_v31 = vpop.f32.mrf.mxu1  ;;  %v478_v32 = vpop.f32.mrf.mxu0 }
 0x1cf   :  { %v719_v33 = vmul.f32 -1.442695, %v436_v29  ;;  %v721_v34 = vmul.f32 -1.442695, %v477_v30  ;;  %v438_v35 = vadd.f32 %v437_v31, %v205_v25  ;;  %v479_v36 = vadd.f32 %v478_v32, %v213_v26 }
 0x1d0   :  { %v439_v37 = vpop.f32.mrf.mxu1  ;;  %v480_v38 = vpop.f32.mrf.mxu0 }
 0x1d1   :  { %761 = vpow2.f32 %v719_v33  ;;  %v720_v39 = vmul.f32 -1.442695, %v438_v35  ;;  %v722_v40 = vmul.f32 -1.442695, %v479_v36 }
 0x1d2   :  { %763 = vpow2.f32 %v721_v34  ;;  %v440_v41 = vpop.f32.mrf.mxu1  ;;  %v481_v42 = vpop.f32.mrf.mxu0 }
 0x1d3   :  { %765 = vpow2.f32 %v720_v39 }
 0x1d4   :  { %767 = vpow2.f32 %v722_v40 }
 0x1dc   :  { %v517_v50 = vpop.f32.mrf.mxu1  ;;  %v558_v51 = vpop.f32.mrf.mxu0 }
 0x1dd   :  { %v518_v53 = vadd.f32 %v517_v50, %v217_v47  ;;  %v559_v55 = vadd.f32 %v558_v51, %v225_v48 }
 0x1de   :  { %v762_v54 = vpop.eup %761  ;;  %v519_v56 = vpop.f32.mrf.mxu1 }
 0x1df   :  { %v560_v57 = vpop.f32.mrf.mxu0  ;;  %v764_v58 = vpop.eup %763  ;;  %v589_v59 = vadd.f32 1.0, %v762_v54  ;;  %v520_v60 = vadd.f32 %v519_v56, %v221_v49  ;;  %v723_v4 = vmul.f32 -1.442695, %v518_v53  ;;  %v725_v6 = vmul.f32 -1.442695, %v559_v55 }
 0x1e0   :  { %v766_v61 = vpop.eup %765  ;;  %v591_v62 = vadd.f32 1.0, %v764_v58  ;;  %v561_v63 = vadd.f32 %v560_v57, %v229_v52  ;;  %v521_v0 = vpop.f32.mrf.mxu1 }
 0x1e1   :  { %v562_v1 = vpop.f32.mrf.mxu0  ;;  %v768_v2 = vpop.eup %767  ;;  %769 = vrcp.f32 %v589_v59  ;;  %v590_v3 = vadd.f32 1.0, %v766_v61  ;;  %v724_v9 = vmul.f32 -1.442695, %v520_v60 }
 0x1e2   :  { %771 = vrcp.f32 %v591_v62  ;;  %v592_v5 = vadd.f32 1.0, %v768_v2  ;;  %v522_v7 = vpop.f32.mrf.mxu1  ;;  %v726_v10 = vmul.f32 -1.442695, %v561_v63 }
 0x1e3   :  { %v563_v8 = vpop.f32.mrf.mxu0  ;;  %773 = vrcp.f32 %v590_v3 }
 0x1e4   :  { %775 = vrcp.f32 %v592_v5 }
 0x1e5   :  { %777 = vpow2.f32 %v723_v4 }
 0x1e6   :  { %779 = vpow2.f32 %v725_v6 }
 0x1e7   :  { %781 = vpow2.f32 %v724_v9 }
 0x1e8   :  { %783 = vpow2.f32 %v726_v10 }
 0x1ee   :  { %v770_v14 = vpop.eup %769 }
 0x1ef   :  { %v772_v15 = vpop.eup %771 }
 0x1f0   :  { %v774_v18 = vpop.eup %773 }
 0x1f1   :  { %v776_v19 = vpop.eup %775  ;;  %v621_v20 = vcombine.low %v770_v14, %v774_v18 }
 0x1f2   :  { %v778_v21 = vpop.eup %777  ;;  %v622_v22 = vcombine.low %v772_v15, %v776_v19 }
 0x1f3   :  { %v780_v23 = vpop.eup %779  ;;  %v593_v24 = vadd.f32 1.0, %v778_v21  ;;  %v629_v25 = vrot.slane %v621_v20, %v628_v16 }
 0x1f4   :  { %v782_v26 = vpop.eup %781  ;;  %v595_v27 = vadd.f32 1.0, %v780_v23  ;;  %v636_v28 = vrot.slane %v622_v22, %v628_v16 }
 0x1f5   :  { %v784_v29 = vpop.eup %783  ;;  %785 = vrcp.f32 %v593_v24  ;;  %v594_v30 = vadd.f32 1.0, %v782_v26 }
 0x1f6   :  { %787 = vrcp.f32 %v595_v27  ;;  %v596_v31 = vadd.f32 1.0, %v784_v29  ;;  %v637_v32 = vcombine.low %v629_v25, %v636_v28 }
 0x1f7   :  { %789 = vrcp.f32 %v594_v30 }
 0x1f8   :  { %791 = vrcp.f32 %v596_v31  ;;  %657 = vst [vmem:[#allocation10] sm:$0xff] %v637_v32 }
 0x202   :  { %v786_v17 = vpop.eup %785 }
 0x203   :  { %v788_v33 = vpop.eup %787 }
 0x204   :  { %v790_v34 = vpop.eup %789 }
 0x205   :  { %v792_v35 = vpop.eup %791  ;;  %v638_v36 = vcombine.low %v786_v17, %v790_v34 }
 0x206   :  { %v639_v37 = vcombine.low %v788_v33, %v792_v35 }
 0x207   :  { %v646_v38 = vrot.slane %v638_v36, %v628_v16 }
 0x208   :  { %v653_v39 = vrot.slane %v639_v37, %v628_v16 }
 0x20a   :  { %v654_v40 = vcombine.low %v646_v38, %v653_v39 }
 0x20c   :  { %658 = vst [vmem:[#allocation10 + $0x8] sm:$0xff] %v654_v40 }
 0x20d   :  { %884 = shalt.err (!%p881_p10)
}
 0x20e   :  { %668 = dma.vmem_to_hbm [thread:$0]  %s666_s15, 256, %s983_s5, [#allocation4]  }
 0x20f   :  { %899 = dma.done.wait [#allocation4], 256  }
 0x210   :  { %900 = vsyncadd [#allocation4], 4294967040 }
 0x211   :  { %672 = vsyncpa [#allocation3], 1 }
 0x212   :  { %673 = vsyncpa [#allocation6], 1 }
 0x213   :  { %674 = vsyncpa [#allocation9], 1 }
 0x214   :  { %675 = vsyncpa [#allocation4], 1 }

</bundles_post_ra>
